<compile_context>
chip_gen: v6e
topology: v6e:2x2x1
jax: 0.10.0
libtpu: 0.0.40
codegen_flags: <defaults>
</compile_context>

<pallas_src>
import math

import jax
import jax.numpy as jnp
from jax.experimental import pallas as pl
from jax.experimental.pallas import tpu as pltpu


def _round_up(x, m):
    return ((x + m - 1) // m) * m


# ----------------------------- Pallas kernel ------------------------------ #
def mlp_block_kernel(xT_ref, w1_ref, b1_ref, w2_ref, b2_ref, w3_ref, b3_ref, o_ref):
    # Feature-major layout: activations are (features, batch_tile) so the big
    # batch dim is dense on lanes; features (16/32/32/8) sit on sublanes.
    xT = xT_ref[...]

    # Linear0 + ReLU: (d_h1, d_in) @ (d_in, tile_b) -> (d_h1, tile_b)
    h = jnp.dot(w1_ref[...], xT, preferred_element_type=jnp.float32)
    h = jnp.maximum(h + b1_ref[...], 0.0)          # bias/ReLU in f32

    # Linear1 + ReLU
    h = jnp.dot(w2_ref[...], h.astype(w2_ref.dtype),
                preferred_element_type=jnp.float32)
    h = jnp.maximum(h + b2_ref[...], 0.0)

    # Linear2 (output layer, no activation)
    y = jnp.dot(w3_ref[...], h.astype(w3_ref.dtype),
                preferred_element_type=jnp.float32)
    y = y + b3_ref[...]

    o_ref[...] = y.astype(o_ref.dtype)


def mlp_block_forward(x, params, *, compute_dtype=jnp.float32, max_tile_b=4096):
    """Fused MLP forward.

    x: (B, dim_input) float32 (same layout as the PyTorch module input).
    params: dict l0/l1/l2 -> (W (out, in), b (out, 1))  [PyTorch orientation].
    compute_dtype: dtype for x/W streams fed to the MXU (f32 or bf16);
                   accumulation, bias and ReLU always stay f32.
    """
    (w1, b1), (w2, b2), (w3, b3) = params["l0"], params["l1"], params["l2"]
    B, d_in = x.shape
    d_out = w3.shape[0]

    # Batch on lanes: pad B to a lane multiple, then tile with large tiles.
    B_lane = _round_up(B, 128)
    tile_b = min(max_tile_b, B_lane)
    B_pad = _round_up(B_lane, tile_b)

    xT = x.T                                    # layout plumbing: (d_in, B)
    if B_pad != B:
        xT = jnp.pad(xT, ((0, 0), (0, B_pad - B)))
    xT = xT.astype(compute_dtype)
    w1c = w1.astype(compute_dtype)
    w2c = w2.astype(compute_dtype)
    w3c = w3.astype(compute_dtype)

    grid = (B_pad // tile_b,)

    # Small weights/biases: whole-array VMEM residents (no per-step pipelining).
    resident = pl.BlockSpec(memory_space=pltpu.MemorySpace.VMEM)

    yT = pl.pallas_call(
        mlp_block_kernel,
        out_shape=jax.ShapeDtypeStruct((d_out, B_pad), x.dtype),
        grid_spec=pltpu.PrefetchScalarGridSpec(
            num_scalar_prefetch=0,
            grid=grid,
            in_specs=[
                pl.BlockSpec((d_in, tile_b), lambda i: (0, i)),  # x^T tile
                resident, resident,                              # w1, b1
                resident, resident,                              # w2, b2
                resident, resident,                              # w3, b3
            ],
            out_specs=pl.BlockSpec((d_out, tile_b), lambda i: (0, i)),
        ),
        compiler_params=pltpu.CompilerParams(
            dimension_semantics=("parallel",),
        ),
    )(xT, w1c, b1, w2c, b2, w3c, b3)

    return yT[:, :B].T                          # back to (B, d_out)


# ----------------------- deterministic parameter init --------------------- #
def xavier_uniform(key, fan_in, fan_out, dtype=jnp.float32):
    # matches torch.nn.init.xavier_uniform_ bound for an nn.Linear weight
    bound = math.sqrt(6.0 / (fan_in + fan_out))
    # stored PyTorch-style (out, in)
    return jax.random.uniform(key, (fan_out, fan_in), dtype,
                              minval=-bound, maxval=bound)


def init_params(key, dim_input, hidden_sizes, dim_output):
    sizes = [dim_input] + list(hidden_sizes) + [dim_output]
    params = {}
    keys = jax.random.split(key, len(sizes) - 1)
    for i in range(len(sizes) - 1):
        w = xavier_uniform(keys[i], sizes[i], sizes[i + 1])
        # PyTorch reset_parameters uses zeros_ for bias; kept as a column
        # vector (out, 1) to broadcast over the lane (batch) axis in-kernel.
        b = jnp.zeros((sizes[i + 1], 1), jnp.float32)
        params[f"l{i}"] = (w, b)
    return params


# ------------------------------- reference -------------------------------- #
def mlp_block_ref(x, params):
    (w1, b1), (w2, b2), (w3, b3) = params["l0"], params["l1"], params["l2"]
    h = jnp.maximum(x @ w1.T + b1.T, 0.0)
    h = jnp.maximum(h @ w2.T + b2.T, 0.0)
    return h @ w3.T + b3.T


if __name__ == "__main__":
    dim_input, hidden_sizes, dim_output = 16, [32, 32], 8
    batch = 16

    key = jax.random.PRNGKey(0)
    k_x, k_p, k_b1, k_b2, k_b3 = jax.random.split(key, 5)
    x = jax.random.normal(k_x, (batch, dim_input), jnp.float32)
    params = init_params(k_p, dim_input, hidden_sizes, dim_output)

    # Randomize biases for the test so the bias-add path is actually exercised
    # (the module itself initializes them to zero; forward semantics unchanged).
    params["l0"] = (params["l0"][0], 0.1 * jax.random.normal(k_b1, params["l0"][1].shape))
    params["l1"] = (params["l1"][0], 0.1 * jax.random.normal(k_b2, params["l1"][1].shape))
    params["l2"] = (params["l2"][0], 0.1 * jax.random.normal(k_b3, params["l2"][1].shape))

    ref = mlp_block_ref(x, params)

    # f32 path
    out_f32 = jax.block_until_ready(mlp_block_forward(x, params))
    assert out_f32.shape == (batch, dim_output)
    assert jnp.allclose(out_f32, ref, atol=1e-5, rtol=1e-5), "f32 mismatch vs reference"

    # bf16 streaming path (f32 accumulation) — looser tolerance
    out_bf16 = jax.block_until_ready(
        mlp_block_forward(x, params, compute_dtype=jnp.bfloat16))
    assert out_bf16.shape == (batch, dim_output)
    assert jnp.allclose(out_bf16, ref, atol=5e-2, rtol=5e-2), "bf16 mismatch vs reference"

    print("KERNEL_OK")
</pallas_src>

<mosaic_0001>
module attributes {stable_mosaic.version = 11 : i64} {
  func.func @mlp_block_kernel(%arg0: i32, %arg1: memref<16x128xf32, #tpu.memory_space<vmem>>, %arg2: memref<32x16xf32, #tpu.memory_space<vmem>>, %arg3: memref<32x1xf32, #tpu.memory_space<vmem>>, %arg4: memref<32x32xf32, #tpu.memory_space<vmem>>, %arg5: memref<32x1xf32, #tpu.memory_space<vmem>>, %arg6: memref<8x32xf32, #tpu.memory_space<vmem>>, %arg7: memref<8x1xf32, #tpu.memory_space<vmem>>, %arg8: memref<8x128xf32, #tpu.memory_space<vmem>>) attributes {dimension_semantics = [#tpu.dimension_semantics<parallel>], iteration_bounds = array<i64: 1>, scalar_prefetch = 0 : i64, scratch_operands = 0 : i64, tpu.core_type = #tpu.core_type<tc>, window_params = [{transform_indices = @transform_0, window_bounds = array<i64: 16, 128>}, {pipeline_mode = #tpu.pipeline_mode<synchronous>, transform_indices = @transform_1, window_bounds = array<i64: 32, 16>}, {pipeline_mode = #tpu.pipeline_mode<synchronous>, transform_indices = @transform_2, window_bounds = array<i64: 32, 1>}, {pipeline_mode = #tpu.pipeline_mode<synchronous>, transform_indices = @transform_3, window_bounds = array<i64: 32, 32>}, {pipeline_mode = #tpu.pipeline_mode<synchronous>, transform_indices = @transform_4, window_bounds = array<i64: 32, 1>}, {pipeline_mode = #tpu.pipeline_mode<synchronous>, transform_indices = @transform_5, window_bounds = array<i64: 8, 32>}, {pipeline_mode = #tpu.pipeline_mode<synchronous>, transform_indices = @transform_6, window_bounds = array<i64: 8, 1>}, {transform_indices = @transform_7, window_bounds = array<i64: 8, 128>}]} {
    %c0 = arith.constant 0 : index
    %c0_0 = arith.constant 0 : index
    %0 = vector.load %arg1[%c0, %c0_0] : memref<16x128xf32, #tpu.memory_space<vmem>>, vector<16x128xf32>
    %c0_1 = arith.constant 0 : index
    %c0_2 = arith.constant 0 : index
    %1 = vector.load %arg2[%c0_1, %c0_2] : memref<32x16xf32, #tpu.memory_space<vmem>>, vector<32x16xf32>
    %cst = arith.constant dense<0.000000e+00> : vector<32x128xf32>
    %2 = tpu.matmul %1, %0, %cst {dimension_numbers = #tpu.dot_dimension_numbers<[1], [0], [0], [1], [0, 0, 1, 1], [], []>} : vector<32x16xf32>, vector<16x128xf32>, vector<32x128xf32> -> vector<32x128xf32>
    %c0_3 = arith.constant 0 : index
    %c0_4 = arith.constant 0 : index
    %3 = vector.load %arg3[%c0_3, %c0_4] : memref<32x1xf32, #tpu.memory_space<vmem>>, vector<32x1xf32>
    %4 = vector.broadcast %3 : vector<32x1xf32> to vector<32x128xf32>
    %5 = arith.addf %2, %4 : vector<32x128xf32>
    %cst_5 = arith.constant 0.000000e+00 : f32
    %6 = vector.broadcast %cst_5 : f32 to vector<32x128xf32>
    %7 = arith.maximumf %5, %6 : vector<32x128xf32>
    %c0_6 = arith.constant 0 : index
    %c0_7 = arith.constant 0 : index
    %8 = vector.load %arg4[%c0_6, %c0_7] : memref<32x32xf32, #tpu.memory_space<vmem>>, vector<32x32xf32>
    %cst_8 = arith.constant dense<0.000000e+00> : vector<32x128xf32>
    %9 = tpu.matmul %8, %7, %cst_8 {dimension_numbers = #tpu.dot_dimension_numbers<[1], [0], [0], [1], [0, 0, 1, 1], [], []>} : vector<32x32xf32>, vector<32x128xf32>, vector<32x128xf32> -> vector<32x128xf32>
    %c0_9 = arith.constant 0 : index
    %c0_10 = arith.constant 0 : index
    %10 = vector.load %arg5[%c0_9, %c0_10] : memref<32x1xf32, #tpu.memory_space<vmem>>, vector<32x1xf32>
    %11 = vector.broadcast %10 : vector<32x1xf32> to vector<32x128xf32>
    %12 = arith.addf %9, %11 : vector<32x128xf32>
    %cst_11 = arith.constant 0.000000e+00 : f32
    %13 = vector.broadcast %cst_11 : f32 to vector<32x128xf32>
    %14 = arith.maximumf %12, %13 : vector<32x128xf32>
    %c0_12 = arith.constant 0 : index
    %c0_13 = arith.constant 0 : index
    %15 = vector.load %arg6[%c0_12, %c0_13] : memref<8x32xf32, #tpu.memory_space<vmem>>, vector<8x32xf32>
    %cst_14 = arith.constant dense<0.000000e+00> : vector<8x128xf32>
    %16 = tpu.matmul %15, %14, %cst_14 {dimension_numbers = #tpu.dot_dimension_numbers<[1], [0], [0], [1], [0, 0, 1, 1], [], []>} : vector<8x32xf32>, vector<32x128xf32>, vector<8x128xf32> -> vector<8x128xf32>
    %c0_15 = arith.constant 0 : index
    %c0_16 = arith.constant 0 : index
    %17 = vector.load %arg7[%c0_15, %c0_16] : memref<8x1xf32, #tpu.memory_space<vmem>>, vector<8x1xf32>
    %18 = vector.broadcast %17 : vector<8x1xf32> to vector<8x128xf32>
    %19 = arith.addf %16, %18 : vector<8x128xf32>
    %c0_17 = arith.constant 0 : index
    %c0_18 = arith.constant 0 : index
    %20 = vector.load %arg8[%c0_17, %c0_18] : memref<8x128xf32, #tpu.memory_space<vmem>>, vector<8x128xf32>
    tpu.vector_store %arg8[%c0_17, %c0_18], %19 {strides = array<i32>} : memref<8x128xf32, #tpu.memory_space<vmem>>, vector<8x128xf32>,
    return
  }
  func.func @transform_0(%arg0: i32) -> (i32, i32) {
    %c0_i32 = arith.constant 0 : i32
    %c0_i32_0 = arith.constant 0 : i32
    return %c0_i32, %arg0 : i32, i32
  }
  func.func @transform_1(%arg0: i32) -> (i32, i32) {
    %c0_i32 = arith.constant 0 : i32
    %c0_i32_0 = arith.constant 0 : i32
    %c0_i32_1 = arith.constant 0 : i32
    return %c0_i32, %c0_i32_0 : i32, i32
  }
  func.func @transform_2(%arg0: i32) -> (i32, i32) {
    %c0_i32 = arith.constant 0 : i32
    %c0_i32_0 = arith.constant 0 : i32
    %c0_i32_1 = arith.constant 0 : i32
    return %c0_i32, %c0_i32_0 : i32, i32
  }
  func.func @transform_3(%arg0: i32) -> (i32, i32) {
    %c0_i32 = arith.constant 0 : i32
    %c0_i32_0 = arith.constant 0 : i32
    %c0_i32_1 = arith.constant 0 : i32
    return %c0_i32, %c0_i32_0 : i32, i32
  }
  func.func @transform_4(%arg0: i32) -> (i32, i32) {
    %c0_i32 = arith.constant 0 : i32
    %c0_i32_0 = arith.constant 0 : i32
    %c0_i32_1 = arith.constant 0 : i32
    return %c0_i32, %c0_i32_0 : i32, i32
  }
  func.func @transform_5(%arg0: i32) -> (i32, i32) {
    %c0_i32 = arith.constant 0 : i32
    %c0_i32_0 = arith.constant 0 : i32
    %c0_i32_1 = arith.constant 0 : i32
    return %c0_i32, %c0_i32_0 : i32, i32
  }
  func.func @transform_6(%arg0: i32) -> (i32, i32) {
    %c0_i32 = arith.constant 0 : i32
    %c0_i32_0 = arith.constant 0 : i32
    %c0_i32_1 = arith.constant 0 : i32
    return %c0_i32, %c0_i32_0 : i32, i32
  }
  func.func @transform_7(%arg0: i32) -> (i32, i32) {
    %c0_i32 = arith.constant 0 : i32
    %c0_i32_0 = arith.constant 0 : i32
    return %c0_i32, %arg0 : i32, i32
  }
}

</mosaic_0001>

<bundles_post_ra>
// kernel: tpu_custom_call.1
= control target key start
LH: loop header
LB: loop body
LE: loop exit
PB: predicated region body
PF: predicated region fallthrough
CT: control target
= control target key end

     0   :  { %vm57_vm0 = vcmask 130048   ;;  %v475_v4 = vmov 0   ;;  %s591_s0 = inlined_call_operand.vmem [shape: f32[16,128], index: 0, kind: input, shape index: {}]   ;;  %s592_s1 = inlined_call_operand.vmem [shape: f32[32,16], index: 1, kind: input, shape index: {}]   ;;  %s593_s2 = inlined_call_operand.vmem [shape: f32[32,1], index: 2, kind: input, shape index: {}]   ;;  %s594_s3 = inlined_call_operand.vmem [shape: f32[32,32], index: 3, kind: input, shape index: {}]   ;;  %s595_s4 = inlined_call_operand.vmem [shape: f32[32,1], index: 4, kind: input, shape index: {}]   ;;  %s596_s5 = inlined_call_operand.vmem [shape: f32[8,32], index: 5, kind: input, shape index: {}]   ;;  %s597_s6 = inlined_call_operand.vmem [shape: f32[8,1], index: 6, kind: input, shape index: {}]   ;;  %s598_s7 = inlined_call_operand.hbm [shape: f32[8,128], index: 7, kind: output, shape index: {}]  }
   0x1   :  { %v28_v0 = vld [vmem:[%s591_s0 + $0x8] sm:$0xff]  ;;  %v27_v1 = vld [vmem:[%s591_s0] sm:$0xff]  ;;  %451 = vset.pattern.permute.xlu0 %v475_v4  ;;  %v36_v5 = vld [vmem:[%s593_s2 + $0x18] sm:$0xff]  ;;  %452 = vset.pattern.permute.xlu1 %v475_v4 }
   0x2   :  { %v29_v2 = vld [vmem:[%s592_s1] sm:$0xff]  ;;  %412 = vmatprep.subr.mxu0 %v28_v0  ;;  %v30_v3 = vld [vmem:[%s592_s1 + $0x8] sm:$0xff]  ;;  %v31_v6 = vld [vmem:[%s592_s1 + $0x10] sm:$0xff]  ;;  %54 = vperm.xlu0 %451, %v36_v5  }
   0x3   :  { %416 = vmatprep.mubr.msk.f32.mxu0 %vm57_vm0, %v29_v2  ;;  %413 = vmatpush3.msra.mxu0 %v28_v0  ;;  %v34_v7 = vld [vmem:[%s593_s2 + $0x8] sm:$0xff]  ;;  %v35_v8 = vld [vmem:[%s593_s2 + $0x10] sm:$0xff] }
   0x4   :  { %414 = vmatprep.subr.mxu0 %v27_v1  ;;  %44 = vperm.xlu1 %452, %v34_v7  }
   0x5   :  { %415 = vmatpush3.msra.mxu0 %v27_v1 }
   0x6   :  { %417 = vmatmul.mubr.msk.f32.vlgmr.msra.gmra.mxu0 %vm57_vm0, %v30_v3 }
   0x7   :  { %12 = vsyncpa [#allocation3], 0  ;;  %419 = vmatprep.mubr.msk.f32.mxu0 %vm57_vm0, %v31_v6  ;;  %v32_v9 = vld [vmem:[%s592_s1 + $0x18] sm:$0xff]  ;;  %v33_v10 = vld [vmem:[%s593_s2] sm:$0xff]  ;;  %49 = vperm.xlu0 %451, %v35_v8   ;;  %vm187_vm1 = vcmask 261120   ;;  %v476_v36 = vmov 0.0  }
   0x8   :  { %v166_v11 = vld [vmem:[%s595_s4 + $0x18] sm:$0xff]  ;;  %39 = vperm.xlu1 %452, %v33_v10   ;;  %v165_v12 = vld [vmem:[%s595_s4 + $0x10] sm:$0xff]  ;;  %v164_v13 = vld [vmem:[%s595_s4 + $0x8] sm:$0xff]  ;;  %436 = vmatprep.subr.mxu0 %v476_v36  ;;  %vm477_vm2 = vmmov 0   ;;  %s478_s11 = smov [#allocation2]  }
   0x9   :  { %v163_v14 = vld [vmem:[%s595_s4] sm:$0xff]  ;;  %v160_v33 = vld [vmem:[%s594_s3 + $0x8] sm:$0xff]  ;;  %v161_v34 = vld [vmem:[%s594_s3 + $0x10] sm:$0xff]  ;;  %s376_s12 = sshll.u32 %s478_s11, 4  ;;  %s377_s12 = int_to_ptr.vmem [resolvable:$true] %s376_s12 }
   0xa   :  { %420 = vmatmul.mubr.msk.f32.gmra.mxu0 %vm57_vm0, %v32_v9  ;;  %v290_v15 = vld [vmem:[%s597_s6] sm:$0xff]  ;;  %v162_v35 = vld [vmem:[%s594_s3 + $0x18] sm:$0xff]  ;;  %s453_s13 = scalar_lea.vmem %s377_s12, 128  ;;  %p458_p1 = scmp.lt.s32.totalorder %s377_s12, %s377_s12 }
   0xb   :  { %184 = vperm.xlu0 %451, %v166_v11   ;;  %v159_v16 = vld [vmem:[%s594_s3] sm:$0xff]  ;;  %444 = vmatprep.mubr.msk.f32.mxu0 %vm477_vm2, %v476_v36  ;;  %p454_p0 = scmp.ne.s32.totalorder %s377_s12, %s453_s13  ;;  %p459_p2 = scmp.lt.s32.totalorder %s453_s13, %s453_s13 }
   0xc   :  { %179 = vperm.xlu1 %452, %v165_v12   ;;  %430 = vmatprep.mubr.msk.f32.mxu1 %vm187_vm1, %v159_v16  ;;  %v289_v53 = vld [vmem:[%s596_s5] sm:$0xff] }
   0xd   :  { %p460_p3 = por %p459_p2, %p458_p1 }
   0xf   :  { %174 = vperm.xlu0 %451, %v164_v13   ;;  %p461_p4 = pnand %p460_p3, %p454_p0 }
  0x10   :  { %169 = vperm.xlu1 %452, %v163_v14  }
  0x13   :  { %293 = vperm.xlu0 %451, %v290_v15  }
  0x7d   :  { %v55_v17 = vpop.permute.xlu0 %54 }
  0x7f   :  { %v45_v19 = vpop.permute.xlu1 %44 }
  0x82   :  { %v50_v23 = vpop.permute.xlu0 %49 }
  0x83   :  { %v40_v28 = vpop.permute.xlu1 %39 }
  0x86   :  { %v185_v37 = vpop.permute.xlu0 %184 }
  0x87   :  { %v180_v39 = vpop.permute.xlu1 %179 }
  0x8a   :  { %v175_v43 = vpop.permute.xlu0 %174 }
  0x8b   :  { %v170_v48 = vpop.permute.xlu1 %169 }
  0x8e   :  { %v294_v54 = vpop.permute.xlu0 %293 }
  0xc6   :  { %v418_v18 = vpop.f32.mrf.mxu0 }
  0xc7   :  { %v142_v25 = vadd.f32 %v418_v18, %v45_v19 }
  0xc8   :  { %v136_v20 = vpop.f32.mrf.mxu0 }
  0xc9   :  { %v137_v29 = vadd.f32 %v136_v20, %v40_v28  ;;  %v156_v31 = vmax.f32 %v142_v25, 0.0 }
  0xca   :  { %v421_v21 = vpop.f32.mrf.mxu0 }
  0xcb   :  { %v152_v22 = vadd.f32 %v421_v21, %v55_v17  ;;  %v155_v32 = vmax.f32 %v137_v29, 0.0 }
  0xcc   :  { %v146_v24 = vpop.f32.mrf.mxu0 }
  0xcd   :  { %v158_v26 = vmax.f32 %v152_v22, 0.0  ;;  %v147_v27 = vadd.f32 %v146_v24, %v50_v23 }
  0xcf   :  { %v157_v30 = vmax.f32 %v147_v27, 0.0  ;;  %422 = vmatprep.subr.mxu1 %v158_v26 }
  0xd0   :  { %423 = vmatpush3.msra.mxu1 %v158_v26 }
  0xd1   :  { %424 = vmatprep.subr.mxu1 %v157_v30 }
  0xd2   :  { %425 = vmatpush3.msra.mxu1 %v157_v30 }
  0xd3   :  { %426 = vmatprep.subr.mxu1 %v156_v31 }
  0xd4   :  { %427 = vmatpush3.msra.mxu1 %v156_v31 }
  0xd5   :  { %428 = vmatprep.subr.mxu1 %v155_v32 }
  0xd6   :  { %429 = vmatpush3.msra.mxu1 %v155_v32 }
  0xd7   :  { %431 = vmatmul.mubr.msk.f32.vlgmr.msra.gmra.mxu1 %vm187_vm1, %v160_v33 }
  0xd8   :  { %433 = vmatprep.mubr.msk.f32.mxu1 %vm187_vm1, %v161_v34 }
  0xdb   :  { %434 = vmatmul.mubr.msk.f32.gmra.mxu1 %vm187_vm1, %v162_v35 }
 0x197   :  { %v432_v38 = vpop.f32.mrf.mxu1 }
 0x198   :  { %v272_v45 = vadd.f32 %v432_v38, %v175_v43 }
 0x199   :  { %v266_v40 = vpop.f32.mrf.mxu1 }
 0x19a   :  { %v267_v49 = vadd.f32 %v266_v40, %v170_v48  ;;  %v286_v51 = vmax.f32 %v272_v45, 0.0 }
 0x19b   :  { %v435_v41 = vpop.f32.mrf.mxu1 }
 0x19c   :  { %v282_v42 = vadd.f32 %v435_v41, %v185_v37  ;;  %v285_v52 = vmax.f32 %v267_v49, 0.0 }
 0x19d   :  { %v276_v44 = vpop.f32.mrf.mxu1 }
 0x19e   :  { %v288_v46 = vmax.f32 %v282_v42, 0.0  ;;  %v277_v47 = vadd.f32 %v276_v44, %v180_v39 }
 0x1a0   :  { %v287_v50 = vmax.f32 %v277_v47, 0.0  ;;  %437 = vmatpush3.msra.mxu0 %v288_v46 }
 0x1a1   :  { %438 = vmatprep.subr.mxu0 %v476_v36 }
 0x1a2   :  { %439 = vmatpush3.msra.mxu0 %v287_v50 }
 0x1a3   :  { %440 = vmatprep.subr.mxu0 %v476_v36 }
 0x1a4   :  { %441 = vmatpush3.msra.mxu0 %v286_v51 }
 0x1a5   :  { %442 = vmatprep.subr.mxu0 %v476_v36 }
 0x1a6   :  { %443 = vmatpush3.msra.mxu0 %v285_v52 }
 0x1a7   :  { %445 = vmatmul.mubr.msk.f32.vlgmr.msra.gmra.mxu0 %vm187_vm1, %v289_v53 }
 0x267   :  { %v365_v55 = vpop.f32.mrf.mxu0 }
 0x268   :  { %v366_v56 = vadd.f32 %v365_v55, %v294_v54 }
 0x269   :  { %v446_v57 = vpop.f32.mrf.mxu0 }
 0x26a   :  { %369 = vst [vmem:[#allocation2] sm:$0xff] %v366_v56 }
 0x26b   :  { %464 = shalt.err (!%p461_p4)
}
 0x26c   :  { %379 = dma.vmem_to_hbm [thread:$0]  %s377_s12, 128, %s598_s7, [#allocation3]  }
 0x26d   :  { %473 = dma.done.wait [#allocation3], 128  }
 0x26e   :  { %474 = vsyncadd [#allocation3], 4294967168 }
 0x26f   :  { %383 = vsyncpa [#allocation3], 1 }

</bundles_post_ra>
